<compile_context>
chip_gen: v6e
topology: v6e:2x2x1
jax: 0.10.0
libtpu: 0.0.40
codegen_flags: <defaults>
</compile_context>

<pallas_src>
import functools
import math

import jax
import jax.numpy as jnp
from jax.experimental import pallas as pl
from jax.experimental.pallas import tpu as pltpu

_LANE = 128      # vreg lane width (last dim)
_SUBLANE = 8     # f32 sublane count (second-to-last dim)


def _round_up(n, m):
    return ((n + m - 1) // m) * m


def _fused_mlp_kernel(*refs, n_layers: int):
    """refs = (x_ref, w0, b0, ..., w_{L-1}, b_{L-1}, o_ref).

    Computes o = Linear_{L-1}(tanh(... tanh(Linear_0(x)) ...)) fully in-kernel.
    Dots run on the MXU in the weights' dtype (bf16) with f32 accumulation;
    bias-add and tanh (EUP slot) are f32.
    """
    x_ref = refs[0]
    o_ref = refs[-1]
    h = x_ref[...].astype(jnp.float32)
    for i in range(n_layers):
        w_ref = refs[1 + 2 * i]
        b_ref = refs[2 + 2 * i]
        h = jnp.dot(h.astype(w_ref.dtype), w_ref[...],
                    preferred_element_type=jnp.float32)
        h = h + b_ref[...]          # (1, D_out) broadcasts over rows
        if i < n_layers - 1:
            h = jnp.tanh(h)
    o_ref[...] = h.astype(o_ref.dtype)


def init_classifier_params(key, layer_dims):
    """Deterministic init mirroring nn.Linear's U(-1/sqrt(fan_in), 1/sqrt(fan_in))."""
    params = []
    for i in range(1, len(layer_dims)):
        d_in, d_out = layer_dims[i - 1], layer_dims[i]
        key, kw, kb = jax.random.split(key, 3)
        bound = 1.0 / math.sqrt(d_in)
        # stored as (D_in, D_out) -- transposed from PyTorch's (out, in)
        w = jax.random.uniform(kw, (d_in, d_out), jnp.float32, -bound, bound)
        b = jax.random.uniform(kb, (d_out,), jnp.float32, -bound, bound)
        params.append((w, b))
    return params


def pad_params_for_tpu(params, weight_dtype=jnp.bfloat16):
    """One-time parameter prep.

    * Hidden (inter-layer) dims zero-padded to 128-lane multiples (exact
      through the tanh chain: padded rows/cols/biases are zero, tanh(0)=0).
    * First layer keeps the raw D_in and last layer keeps the raw D_out so the
      forward wrapper needs no pad/slice around the pallas_call.
    * Weights cast to bf16 (MXU-native); biases kept f32 and reshaped (1, D).
    """
    n = len(params)
    padded = []
    for i, (w, b) in enumerate(params):
        d_in, d_out = w.shape
        d_in_p = d_in if i == 0 else _round_up(d_in, _LANE)
        d_out_p = d_out if i == n - 1 else _round_up(d_out, _LANE)
        w_p = jnp.zeros((d_in_p, d_out_p), jnp.float32).at[:d_in, :d_out].set(w)
        w_p = w_p.astype(weight_dtype)
        b_p = jnp.zeros((1, d_out_p), jnp.float32).at[0, :d_out].set(b)
        padded.append((w_p, b_p))
    return padded


def _pick_block_b(b_pad, block_b_max):
    """Largest multiple of 8 that divides b_pad, capped at block_b_max, and
    (when b_pad >= 16) capped at b_pad//2 so the batch grid has >= 2 tiles and
    the "parallel" axis can shard across v7x's two TensorCores."""
    cap = min(block_b_max, b_pad)
    if b_pad >= 2 * _SUBLANE:
        cap = min(cap, max(_SUBLANE, (b_pad // 2) // _SUBLANE * _SUBLANE))
    cap = max(_SUBLANE, cap - cap % _SUBLANE)
    for cand in range(cap, 0, -_SUBLANE):
        if b_pad % cand == 0:
            return cand
    return _SUBLANE


def classifier_forward(padded_params, x, *, block_b_max=512,
                       single_buffer_weights=False):
    """Fused MLP forward.  x: (B, D_in) float32 -> (B, D_out) float32."""
    B, d_in = x.shape
    n_layers = len(padded_params)
    out_dim = padded_params[-1][0].shape[1]

    # Batch is only padded (by at most 7 rows) when B % 8 != 0; the feature
    # dim is never padded on the wrapper side.
    b_pad = _round_up(B, _SUBLANE)
    block_b = _pick_block_b(b_pad, block_b_max)
    grid = (b_pad // block_b,)
    x_in = x if b_pad == B else jnp.zeros((b_pad, d_in), x.dtype).at[:B].set(x)

    # Optional v7x knob: a constant index_map means the second pipeline buffer
    # for the weights is pure VMEM waste -- Buffered(1) halves their footprint.
    weight_kwargs = (
        {"pipeline_mode": pl.Buffered(1)} if single_buffer_weights else {})

    in_specs = [pl.BlockSpec((block_b, d_in), lambda i: (i, 0))]
    args = [x_in]
    vmem_bytes = 2 * block_b * d_in * x.dtype.itemsize          # input, 2 bufs
    for (w, b) in padded_params:
        # Constant index maps -> weights/biases stay VMEM-resident across grid.
        in_specs.append(pl.BlockSpec(w.shape, lambda i: (0, 0), **weight_kwargs))
        in_specs.append(pl.BlockSpec(b.shape, lambda i: (0, 0), **weight_kwargs))
        args.append(w)
        args.append(b)
        nbuf = 1 if single_buffer_weights else 2
        vmem_bytes += nbuf * (w.size * w.dtype.itemsize +
                              b.size * b.dtype.itemsize)
        vmem_bytes += 4 * block_b * w.shape[1] * 4               # f32 intermediates
    vmem_bytes += 2 * block_b * out_dim * x.dtype.itemsize       # output, 2 bufs
    # Clamp to 64 MiB so the limit is valid on v7x; generous floor/margin.
    # NOTE: for layers whose resident weights approach this budget, switch to a
    # K/N-tiled grid (reduction axis last, accumulator scratch + pl.when).
    vmem_limit = int(min(64 << 20, max(16 << 20, 2 * vmem_bytes)))

    kernel = functools.partial(_fused_mlp_kernel, n_layers=n_layers)
    out = pl.pallas_call(
        kernel,
        out_shape=jax.ShapeDtypeStruct((b_pad, out_dim), x.dtype),
        grid=grid,
        in_specs=in_specs,
        out_specs=pl.BlockSpec((block_b, out_dim), lambda i: (i, 0)),
        compiler_params=pltpu.CompilerParams(
            dimension_semantics=("parallel",),
            vmem_limit_bytes=vmem_limit),
    )(*args)

    return out if b_pad == B else out[:B]


if __name__ == "__main__":
    layer_dims = [32, 64, 48, 10]   # 3 Linear layers: 2 hidden (tanh) + output
    batch = 8

    key = jax.random.PRNGKey(0)
    key_x, key_p = jax.random.split(key)
    x = jax.random.normal(key_x, (batch, layer_dims[0]), dtype=jnp.float32)

    params = init_classifier_params(key_p, layer_dims)
    padded_params = pad_params_for_tpu(params)   # pad + bf16 cast, done once

    fwd = jax.jit(classifier_forward)
    out = fwd(padded_params, x)
    jax.block_until_ready(out)
    assert out.shape == (batch, layer_dims[-1])

    # Reference A: plain-JAX forward with the SAME bf16 weights / f32 accum
    # recipe (tight tolerance -- checks the kernel itself).
    ref_bf = x
    for i, (w_p, b_p) in enumerate(padded_params):
        ref_bf = jnp.dot(ref_bf.astype(w_p.dtype), w_p,
                         preferred_element_type=jnp.float32) + b_p
        if i < len(padded_params) - 1:
            ref_bf = jnp.tanh(ref_bf)
    assert jnp.allclose(out, ref_bf, atol=1e-3, rtol=1e-3), \
        "kernel mismatch vs bf16-weight reference"

    # Reference B: full-f32 PyTorch-equivalent forward (loose tolerance --
    # bounds the drift introduced by the bf16 weight cast).
    ref_f32 = x
    for i, (w, b) in enumerate(params):
        ref_f32 = ref_f32 @ w + b
        if i < len(params) - 1:
            ref_f32 = jnp.tanh(ref_f32)
    assert jnp.allclose(out, ref_f32, atol=5e-2, rtol=5e-2), \
        "excessive drift vs f32 reference"

    print("KERNEL_OK")
</pallas_src>

<mosaic_0001>
module attributes {stable_mosaic.version = 11 : i64} {
  func.func @_fused_mlp_kernel(%arg0: i32, %arg1: memref<8x32xf32, #tpu.memory_space<vmem>>, %arg2: memref<32x128xbf16, #tpu.memory_space<vmem>>, %arg3: memref<1x128xf32, #tpu.memory_space<vmem>>, %arg4: memref<128x128xbf16, #tpu.memory_space<vmem>>, %arg5: memref<1x128xf32, #tpu.memory_space<vmem>>, %arg6: memref<128x10xbf16, #tpu.memory_space<vmem>>, %arg7: memref<1x10xf32, #tpu.memory_space<vmem>>, %arg8: memref<8x10xf32, #tpu.memory_space<vmem>>) attributes {dimension_semantics = [#tpu.dimension_semantics<parallel>], iteration_bounds = array<i64: 1>, scalar_prefetch = 0 : i64, scratch_operands = 0 : i64, tpu.core_type = #tpu.core_type<tc>, window_params = [{transform_indices = @transform_0, window_bounds = array<i64: 8, 32>}, {pipeline_mode = #tpu.pipeline_mode<synchronous>, transform_indices = @transform_1, window_bounds = array<i64: 32, 128>}, {pipeline_mode = #tpu.pipeline_mode<synchronous>, transform_indices = @transform_2, window_bounds = array<i64: 1, 128>}, {pipeline_mode = #tpu.pipeline_mode<synchronous>, transform_indices = @transform_3, window_bounds = array<i64: 128, 128>}, {pipeline_mode = #tpu.pipeline_mode<synchronous>, transform_indices = @transform_4, window_bounds = array<i64: 1, 128>}, {pipeline_mode = #tpu.pipeline_mode<synchronous>, transform_indices = @transform_5, window_bounds = array<i64: 128, 10>}, {pipeline_mode = #tpu.pipeline_mode<synchronous>, transform_indices = @transform_6, window_bounds = array<i64: 1, 10>}, {transform_indices = @transform_7, window_bounds = array<i64: 8, 10>}]} {
    %c0 = arith.constant 0 : index
    %c0_0 = arith.constant 0 : index
    %0 = vector.load %arg1[%c0, %c0_0] : memref<8x32xf32, #tpu.memory_space<vmem>>, vector<8x32xf32>
    %1 = arith.truncf %0 : vector<8x32xf32> to vector<8x32xbf16>
    %c0_1 = arith.constant 0 : index
    %c0_2 = arith.constant 0 : index
    %2 = vector.load %arg2[%c0_1, %c0_2] : memref<32x128xbf16, #tpu.memory_space<vmem>>, vector<32x128xbf16>
    %cst = arith.constant dense<0.000000e+00> : vector<8x128xf32>
    %3 = tpu.matmul %1, %2, %cst {dimension_numbers = #tpu.dot_dimension_numbers<[1], [0], [0], [1], [0, 0, 1, 1], [], []>} : vector<8x32xbf16>, vector<32x128xbf16>, vector<8x128xf32> -> vector<8x128xf32>
    %c0_3 = arith.constant 0 : index
    %c0_4 = arith.constant 0 : index
    %4 = vector.load %arg3[%c0_3, %c0_4] : memref<1x128xf32, #tpu.memory_space<vmem>>, vector<1x128xf32>
    %5 = vector.broadcast %4 : vector<1x128xf32> to vector<8x128xf32>
    %6 = arith.addf %3, %5 : vector<8x128xf32>
    %7 = math.tanh %6 : vector<8x128xf32>
    %8 = arith.truncf %7 : vector<8x128xf32> to vector<8x128xbf16>
    %c0_5 = arith.constant 0 : index
    %c0_6 = arith.constant 0 : index
    %9 = vector.load %arg4[%c0_5, %c0_6] : memref<128x128xbf16, #tpu.memory_space<vmem>>, vector<128x128xbf16>
    %cst_7 = arith.constant dense<0.000000e+00> : vector<8x128xf32>
    %10 = tpu.matmul %8, %9, %cst_7 {dimension_numbers = #tpu.dot_dimension_numbers<[1], [0], [0], [1], [0, 0, 1, 1], [], []>} : vector<8x128xbf16>, vector<128x128xbf16>, vector<8x128xf32> -> vector<8x128xf32>
    %c0_8 = arith.constant 0 : index
    %c0_9 = arith.constant 0 : index
    %11 = vector.load %arg5[%c0_8, %c0_9] : memref<1x128xf32, #tpu.memory_space<vmem>>, vector<1x128xf32>
    %12 = vector.broadcast %11 : vector<1x128xf32> to vector<8x128xf32>
    %13 = arith.addf %10, %12 : vector<8x128xf32>
    %14 = math.tanh %13 : vector<8x128xf32>
    %15 = arith.truncf %14 : vector<8x128xf32> to vector<8x128xbf16>
    %c0_10 = arith.constant 0 : index
    %c0_11 = arith.constant 0 : index
    %16 = vector.load %arg6[%c0_10, %c0_11] : memref<128x10xbf16, #tpu.memory_space<vmem>>, vector<128x10xbf16>
    %cst_12 = arith.constant dense<0.000000e+00> : vector<8x10xf32>
    %17 = tpu.matmul %15, %16, %cst_12 {dimension_numbers = #tpu.dot_dimension_numbers<[1], [0], [0], [1], [0, 0, 1, 1], [], []>} : vector<8x128xbf16>, vector<128x10xbf16>, vector<8x10xf32> -> vector<8x10xf32>
    %c0_13 = arith.constant 0 : index
    %c0_14 = arith.constant 0 : index
    %18 = vector.load %arg7[%c0_13, %c0_14] : memref<1x10xf32, #tpu.memory_space<vmem>>, vector<1x10xf32>
    %19 = vector.broadcast %18 : vector<1x10xf32> to vector<8x10xf32>
    %20 = arith.addf %17, %19 : vector<8x10xf32>
    %c0_15 = arith.constant 0 : index
    %c0_16 = arith.constant 0 : index
    %21 = vector.load %arg8[%c0_15, %c0_16] : memref<8x10xf32, #tpu.memory_space<vmem>>, vector<8x10xf32>
    tpu.vector_store %arg8[%c0_15, %c0_16], %20 {strides = array<i32>} : memref<8x10xf32, #tpu.memory_space<vmem>>, vector<8x10xf32>,
    return
  }
  func.func @transform_0(%arg0: i32) -> (i32, i32) {
    %c0_i32 = arith.constant 0 : i32
    %c0_i32_0 = arith.constant 0 : i32
    return %arg0, %c0_i32 : i32, i32
  }
  func.func @transform_1(%arg0: i32) -> (i32, i32) {
    %c0_i32 = arith.constant 0 : i32
    %c0_i32_0 = arith.constant 0 : i32
    %c0_i32_1 = arith.constant 0 : i32
    return %c0_i32, %c0_i32_0 : i32, i32
  }
  func.func @transform_2(%arg0: i32) -> (i32, i32) {
    %c0_i32 = arith.constant 0 : i32
    %c0_i32_0 = arith.constant 0 : i32
    %c0_i32_1 = arith.constant 0 : i32
    return %c0_i32, %c0_i32_0 : i32, i32
  }
  func.func @transform_3(%arg0: i32) -> (i32, i32) {
    %c0_i32 = arith.constant 0 : i32
    %c0_i32_0 = arith.constant 0 : i32
    %c0_i32_1 = arith.constant 0 : i32
    return %c0_i32, %c0_i32_0 : i32, i32
  }
  func.func @transform_4(%arg0: i32) -> (i32, i32) {
    %c0_i32 = arith.constant 0 : i32
    %c0_i32_0 = arith.constant 0 : i32
    %c0_i32_1 = arith.constant 0 : i32
    return %c0_i32, %c0_i32_0 : i32, i32
  }
  func.func @transform_5(%arg0: i32) -> (i32, i32) {
    %c0_i32 = arith.constant 0 : i32
    %c0_i32_0 = arith.constant 0 : i32
    %c0_i32_1 = arith.constant 0 : i32
    return %c0_i32, %c0_i32_0 : i32, i32
  }
  func.func @transform_6(%arg0: i32) -> (i32, i32) {
    %c0_i32 = arith.constant 0 : i32
    %c0_i32_0 = arith.constant 0 : i32
    %c0_i32_1 = arith.constant 0 : i32
    return %c0_i32, %c0_i32_0 : i32, i32
  }
  func.func @transform_7(%arg0: i32) -> (i32, i32) {
    %c0_i32 = arith.constant 0 : i32
    %c0_i32_0 = arith.constant 0 : i32
    return %arg0, %c0_i32 : i32, i32
  }
}

</mosaic_0001>

<bundles_post_ra>
// kernel: classifier_forward.1
= control target key start
LH: loop header
LB: loop body
LE: loop exit
PB: predicated region body
PF: predicated region fallthrough
CT: control target
= control target key end

     0   :  { %12 = vsyncpa [#allocation3], 0  ;;  %s653_s0 = inlined_call_operand.vmem [shape: f32[8,32], index: 0, kind: input, shape index: {}]   ;;  %s654_s1 = inlined_call_operand.hbm [shape: bf16[32,128], index: 1, kind: input, shape index: {}]   ;;  %s655_s2 = inlined_call_operand.vmem [shape: f32[1,128], index: 2, kind: input, shape index: {}]   ;;  %s656_s3 = inlined_call_operand.vmem [shape: bf16[128,128], index: 3, kind: input, shape index: {}]   ;;  %s657_s4 = inlined_call_operand.vmem [shape: f32[1,128], index: 4, kind: input, shape index: {}]   ;;  %s658_s5 = inlined_call_operand.vmem [shape: bf16[128,10], index: 5, kind: input, shape index: {}]   ;;  %s659_s6 = inlined_call_operand.vmem [shape: f32[1,10], index: 6, kind: input, shape index: {}]   ;;  %s660_s7 = inlined_call_operand.hbm [shape: f32[8,10], index: 7, kind: output, shape index: {}]  }
   0x1   :  { %13 = vsyncpa [#allocation4], 0  ;;  %s517_s24 = smov [#allocation2]  }
   0x2   :  { %s21_s25 = sshll.u32 %s517_s24, 4  ;;  %s22_s25 = int_to_ptr.vmem [resolvable:$true] %s21_s25 }
   0x3   :  { %s481_s26 = scalar_lea.vmem %s22_s25, 256  ;;  %p486_p1 = scmp.lt.s32.totalorder %s22_s25, %s22_s25 }
   0x4   :  { %p482_p0 = scmp.ne.s32.totalorder %s22_s25, %s481_s26  ;;  %p487_p2 = scmp.lt.s32.totalorder %s481_s26, %s481_s26 }
   0x6   :  { %p488_p3 = por %p487_p2, %p486_p1 }
   0x8   :  { %p489_p4 = pnand %p488_p3, %p482_p0 }
   0xa   :  { %492 = shalt.err (!%p489_p4)
}
   0xb   :  { %s518_s27 = smov 64   ;;  %s519_s28 = smov 4  }
   0xc   :  { %27 = dma.hbm_to_vmem [thread:$0]  %s654_s1, 256, %s22_s25, [#allocation3], %s518_s27, %s518_s27, %s519_s28  }
   0xd   :  { %513 = dma.done.wait [#allocation3], 256  }
   0xe   :  { %514 = vsyncadd [#allocation3], 4294967040  ;;  %v520_v0 = vmov 0.0   ;;  %vm521_vm0 = vmmov 0   ;;  %v451_v1 = vld [vmem:[#allocation2 + $0x8] sm:$0xff]   ;;  %v452_v2 = vld [vmem:[#allocation2] sm:$0xff]  }
   0xf   :  { %397 = vmatprep.subr.bf16.mxu0 %v520_v0  ;;  %401 = vmatprep.mubr.msk.bf16.mxu0 %vm521_vm0, %v520_v0  ;;  %v42_v3 = vld [vmem:[%s653_s0] sm:$0xff]  ;;  %v453_v4 = vld [vmem:[%s656_s3 + $0x38] sm:$0xff]   ;;  %vm67_vm1 = vcmask 261120   ;;  %v454_v6 = vld [vmem:[%s656_s3 + $0x30] sm:$0xff]   ;;  %s522_s19 = smov [#allocation5]   ;;  %vm337_vm2 = vcmask 80896  }
  0x10   :  { %405 = vmatprep.subr.bf16.mxu1 %v520_v0  ;;  %421 = vmatprep.mubr.msk.bf16.mxu1 %vm521_vm0, %v520_v0  ;;  %v43_v5 = vpack.c.bf16 %v42_v3, %v42_v3  ;;  %v455_v7 = vld [vmem:[%s656_s3 + $0x28] sm:$0xff]   ;;  %v456_v8 = vld [vmem:[%s656_s3 + $0x20] sm:$0xff]   ;;  %v457_v9 = vld [vmem:[%s656_s3 + $0x18] sm:$0xff]  }
  0x11   :  { %398 = vmatpush3.bf16.msra.mxu0 %v451_v1  ;;  %406 = vmatpush3.bf16.msra.mxu1 %v453_v4  ;;  %v458_v10 = vld [vmem:[%s656_s3 + $0x10] sm:$0xff]   ;;  %v459_v11 = vld [vmem:[%s656_s3 + $0x8] sm:$0xff]   ;;  %v460_v12 = vld [vmem:[%s656_s3] sm:$0xff]  }
  0x12   :  { %399 = vmatprep.subr.bf16.mxu0 %v520_v0  ;;  %407 = vmatprep.subr.bf16.mxu1 %v520_v0  ;;  %v461_v13 = vld [vmem:[%s658_s5 + $0x38] sm:$0xff]   ;;  %v462_v14 = vld [vmem:[%s658_s5 + $0x30] sm:$0xff]   ;;  %v463_v15 = vld [vmem:[%s658_s5 + $0x28] sm:$0xff]  }
  0x13   :  { %v354_v16 = vld [vmem:[%s655_s2] ss:$0 sm:$0xff]  ;;  %v465_v25 = vld [vmem:[%s658_s5 + $0x18] sm:$0xff]   ;;  %v466_v26 = vld [vmem:[%s658_s5 + $0x10] sm:$0xff]  }
  0x14   :  { %v464_v24 = vld [vmem:[%s658_s5 + $0x20] sm:$0xff]   ;;  %v467_v27 = vld [vmem:[%s658_s5 + $0x8] sm:$0xff]  }
  0x15   :  { %400 = vmatpush3.bf16.msra.mxu0 %v452_v2  ;;  %408 = vmatpush3.bf16.msra.mxu1 %v454_v6  ;;  %v468_v28 = vld [vmem:[%s658_s5] sm:$0xff]   ;;  %s345_s5 = sshll.u32 %s522_s19, 4  ;;  %s346_s5 = int_to_ptr.vmem [resolvable:$true] %s345_s5 }
  0x16   :  { %425 = vmatprep.subr.bf16.mxu0 %v520_v0  ;;  %409 = vmatprep.subr.bf16.mxu1 %v520_v0  ;;  %v358_v29 = vld [vmem:[%s657_s4] ss:$0 sm:$0xff]  ;;  %s493_s4 = scalar_lea.vmem %s346_s5, 128  ;;  %p498_p6 = scmp.lt.s32.totalorder %s346_s5, %s346_s5 }
  0x17   :  { %v367_v37 = vld [vmem:[%s659_s6] ss:$0 sm:$0xff]  ;;  %p494_p5 = scmp.ne.s32.totalorder %s346_s5, %s493_s4  ;;  %p499_p7 = scmp.lt.s32.totalorder %s493_s4, %s493_s4 }
  0x18   :  { %402 = vmatmul.mubr.msk.bf16.vlgmr.msra.gmra.mxu0 %vm67_vm1, %v43_v5 }
  0x19   :  { %441 = vmatprep.mubr.msk.bf16.mxu0 %vm521_vm0, %v520_v0  ;;  %410 = vmatpush3.bf16.msra.mxu1 %v455_v7  ;;  %p500_p8 = por %p499_p7, %p498_p6 }
  0x1a   :  { %411 = vmatprep.subr.bf16.mxu1 %v520_v0  ;;  %426 = vmatpush3.bf16.msra.mxu0 %v461_v13 }
  0x1b   :  { %427 = vmatprep.subr.bf16.mxu0 %v520_v0  ;;  %p501_p9 = pnand %p500_p8, %p494_p5 }
  0x1d   :  { %412 = vmatpush3.bf16.msra.mxu1 %v456_v8 }
  0x1e   :  { %413 = vmatprep.subr.bf16.mxu1 %v520_v0  ;;  %428 = vmatpush3.bf16.msra.mxu0 %v462_v14 }
  0x1f   :  { %429 = vmatprep.subr.bf16.mxu0 %v520_v0 }
  0x21   :  { %414 = vmatpush3.bf16.msra.mxu1 %v457_v9 }
  0x22   :  { %415 = vmatprep.subr.bf16.mxu1 %v520_v0  ;;  %430 = vmatpush3.bf16.msra.mxu0 %v463_v15 }
  0x23   :  { %431 = vmatprep.subr.bf16.mxu0 %v520_v0 }
  0x25   :  { %416 = vmatpush3.bf16.msra.mxu1 %v458_v10 }
  0x26   :  { %417 = vmatprep.subr.bf16.mxu1 %v520_v0  ;;  %432 = vmatpush3.bf16.msra.mxu0 %v464_v24 }
  0x27   :  { %433 = vmatprep.subr.bf16.mxu0 %v520_v0 }
  0x29   :  { %418 = vmatpush3.bf16.msra.mxu1 %v459_v11 }
  0x2a   :  { %419 = vmatprep.subr.bf16.mxu1 %v520_v0  ;;  %434 = vmatpush3.bf16.msra.mxu0 %v465_v25 }
  0x2b   :  { %435 = vmatprep.subr.bf16.mxu0 %v520_v0 }
  0x2d   :  { %420 = vmatpush3.bf16.msra.mxu1 %v460_v12 }
  0x2e   :  { %436 = vmatpush3.bf16.msra.mxu0 %v466_v26 }
  0x2f   :  { %437 = vmatprep.subr.bf16.mxu0 %v520_v0 }
  0x32   :  { %438 = vmatpush3.bf16.msra.mxu0 %v467_v27 }
  0x33   :  { %439 = vmatprep.subr.bf16.mxu0 %v520_v0 }
  0x36   :  { %440 = vmatpush3.bf16.msra.mxu0 %v468_v28 }
  0xd8   :  { %v105_v17 = vpop.f32.mrf.mxu0 }
  0xd9   :  { %v106_v18 = vadd.f32 %v354_v16, %v105_v17 }
  0xda   :  { %v403_v19 = vpop.f32.mrf.mxu0 }
  0xdb   :  { %469 = vtanh.f32 %v106_v18 }
  0xdc   :  { %v108_v20 = vpop.f32.mrf.mxu0 }
  0xde   :  { %v404_v21 = vpop.f32.mrf.mxu0 }
  0xe8   :  { %v470_v22 = vpop.eup %469 }
  0xe9   :  { %v112_v23 = vpack.c.bf16 %v470_v22, %v470_v22 }
  0xeb   :  { %422 = vmatmul.mubr.bf16.vlgmr.msra.gmra.mxu1 %v112_v23 }
 0x1ab   :  { %v218_v30 = vpop.f32.mrf.mxu1 }
 0x1ac   :  { %v219_v31 = vadd.f32 %v358_v29, %v218_v30 }
 0x1ad   :  { %v423_v32 = vpop.f32.mrf.mxu1 }
 0x1ae   :  { %471 = vtanh.f32 %v219_v31 }
 0x1af   :  { %v221_v33 = vpop.f32.mrf.mxu1 }
 0x1b1   :  { %v424_v34 = vpop.f32.mrf.mxu1 }
 0x1bb   :  { %v472_v35 = vpop.eup %471 }
 0x1bc   :  { %v225_v36 = vpack.c.bf16 %v472_v35, %v472_v35 }
 0x1be   :  { %442 = vmatmul.mubr.bf16.vlgmr.msra.gmra.mxu0 %v225_v36 }
 0x27e   :  { %v331_v38 = vpop.f32.mrf.mxu0 }
 0x27f   :  { %v332_v39 = vadd.f32 %v367_v37, %v331_v38 }
 0x280   :  { %v443_v40 = vpop.f32.mrf.mxu0 }
 0x281   :  { %338 = vst.msk [vmem:[#allocation5] sm:$0xff] %vm337_vm2, %v332_v39 }
 0x282   :  { %v334_v41 = vpop.f32.mrf.mxu0 }
 0x283   :  { %504 = shalt.err (!%p501_p9)
}
 0x284   :  { %348 = dma.vmem_to_hbm [thread:$0]  %s346_s5, 128, %s660_s7, [#allocation4]   ;;  %v444_v42 = vpop.f32.mrf.mxu0 }
 0x285   :  { %515 = dma.done.wait [#allocation4], 128  }
 0x286   :  { %516 = vsyncadd [#allocation4], 4294967168 }
 0x287   :  { %352 = vsyncpa [#allocation3], 1 }
 0x288   :  { %353 = vsyncpa [#allocation4], 1 }

</bundles_post_ra>
